<compile_context>
chip_gen: v7x
topology: tpu7x:2x2x1
jax: 0.10.0
libtpu: 0.0.40
codegen_flags: <defaults>
</compile_context>

<pallas_src>
from functools import partial

import jax
import jax.numpy as jnp
from jax.experimental import pallas as pl
from jax.experimental.pallas import tpu as pltpu


# ----------------------------------------------------------------------------
# Pallas kernel: fully fused tanh-MLP chain
#   out = tanh( ... tanh( tanh(x @ W1 + b1) @ W2 + b2 ) ... @ Wn + bn )
# Every stage of the autoencoder (quadconv with pre-flattened filters, latent
# projections, output activation) maps onto this chain, so the full forward is
# a single kernel with all weights resident in VMEM.
# ----------------------------------------------------------------------------
def _fused_tanh_chain_kernel(*refs, n_stages):
    x_ref = refs[0]
    o_ref = refs[-1]
    h = x_ref[...].astype(jnp.float32)
    for s in range(n_stages):
        w = refs[1 + 2 * s][...]                      # (K, N) bf16 (MXU-native)
        b = refs[2 + 2 * s][...]                      # (1, N) f32
        acc = jnp.dot(h.astype(w.dtype), w,           # bf16 x bf16 -> f32 acc
                      preferred_element_type=jnp.float32)
        h = jnp.tanh(acc + b)                         # bias + tanh stay in f32
    o_ref[...] = h.astype(o_ref.dtype)


def _batch_tiling(batch):
    """Pick (batch_tile, padded_batch).

    Pads the batch to a full 8-row sublane group, uses MXU-row tiles up to 256,
    and prefers >= 2 grid steps so the 'parallel' batch axis can shard across
    both TensorCores on v7x once a real batch exists.
    """
    tb = 8
    for cand in (256, 128, 64, 32, 16, 8):
        if batch >= 2 * cand:
            tb = cand
            break
    b_pad = pl.cdiv(batch, tb) * tb
    return tb, b_pad


def pallas_fused_tanh_chain(x, stages, out_dtype=jnp.float32):
    """x: (B, K0) f32; stages: list of (W bf16 (K_s, N_s), b f32 (1, N_s)).

    Returns (B, N_last).  Weight/bias blocks are grid-invariant (VMEM-resident
    across the batch grid); only the activation rows are tiled over the batch.
    All dtype/layout normalization happens once in prepare_network; here we
    only assert so an accidental f32 weight (2x DMA) is caught loudly.
    """
    B, K0 = x.shape
    out_dim = stages[-1][0].shape[1]

    tb, b_pad = _batch_tiling(B)
    if b_pad != B:
        x = jnp.pad(x, ((0, b_pad - B), (0, 0)))
    grid = (b_pad // tb,)

    x = x.astype(jnp.float32)                          # no-op when already f32
    in_specs = [pl.BlockSpec((tb, K0), lambda i: (i, 0))]
    args = [x]
    k = K0
    for (w, b) in stages:
        kw, n = w.shape
        assert kw == k, (kw, k)
        assert w.dtype == jnp.bfloat16, w.dtype        # stored bf16 once, upfront
        assert b.shape == (1, n) and b.dtype == jnp.float32, (b.shape, b.dtype)
        k = n
        # Resident weight + bias (same block every grid step -> no re-DMA).
        in_specs.append(pl.BlockSpec((kw, n), lambda i: (0, 0)))
        in_specs.append(pl.BlockSpec((1, n), lambda i: (0, 0)))
        args.append(w)
        args.append(b)

    out = pl.pallas_call(
        partial(_fused_tanh_chain_kernel, n_stages=len(stages)),
        out_shape=jax.ShapeDtypeStruct((b_pad, out_dim), out_dtype),
        grid_spec=pltpu.PrefetchScalarGridSpec(
            num_scalar_prefetch=0,
            grid=grid,
            in_specs=in_specs,
            out_specs=pl.BlockSpec((tb, out_dim), lambda i: (i, 0)),
        ),
        compiler_params=pltpu.CompilerParams(
            dimension_semantics=("parallel",)),
    )(*args)
    return out[:B] if b_pad != B else out


# ----------------------------------------------------------------------------
# Quadrature-convolution filter construction (mesh-dependent only; built once
# outside jit -- the reference implementation caches this via MeshHandler).
# ----------------------------------------------------------------------------
def _bump(r2, radius):
    s = r2 / (radius * radius)
    safe = jnp.minimum(s, 1.0 - 1e-6)
    val = jnp.exp(1.0 - 1.0 / (1.0 - safe))
    return jnp.where(s < 1.0, val, 0.0)


def quadconv_flat_weight(fp, y_out, x_in, c_in, c_out, quad_w, radius=0.5):
    """Flattened (Cin*Nin, Cout*Nout) quadrature-conv weight, channel-major.

    out[b, co, j] = sum_{i, ci} G[j, i, co, ci] * q_i * x[b, ci, i]
    with G[j,i,co,ci] = bump(|y_j - x_i|) * MLP(y_j - x_i).
    Row index = ci*Nin + i, column index = co*Nout + j (== torch.flatten order)
    so (B, C, N) <-> (B, C*N) conversions are pure reshapes.
    """
    n_out = y_out.shape[0]
    n_in = x_in.shape[0]
    diff = y_out[:, None, :] - x_in[None, :, :]                  # (Nout,Nin,2)
    r2 = jnp.sum(diff * diff, axis=-1)                           # (Nout,Nin)
    h = jnp.tanh(diff @ fp["w1"] + fp["b1"])                     # (Nout,Nin,H)
    g = h @ fp["w2"] + fp["b2"]                                  # (Nout,Nin,Co*Ci)
    G = g.reshape(n_out, n_in, c_out, c_in) * _bump(r2, radius)[..., None, None]
    # W[(ci,i),(co,j)] = G[j,i,co,ci] * q_i
    W = jnp.einsum("jioc,i->cioj", G, quad_w)
    return W.reshape(c_in * n_in, c_out * n_out)


# ----------------------------------------------------------------------------
# Model: parameters, mesh, one-time network preparation, encode/decode/forward
# ----------------------------------------------------------------------------
def init_params(key, *, c_in=4, c_mid=8, n0=64, n1=16, latent_dim=8, hidden=16):
    ks = jax.random.split(key, 12)
    s = 0.1

    def nrm(k, shape):
        return s * jax.random.normal(k, shape, jnp.float32)

    params = {
        # encoder quadconv filter MLP: (n0, c_in) -> (n1, c_mid)
        "enc_filter": {"w1": nrm(ks[0], (2, hidden)), "b1": nrm(ks[1], (hidden,)),
                       "w2": nrm(ks[2], (hidden, c_mid * c_in)),
                       "b2": nrm(ks[3], (c_mid * c_in,))},
        "enc_conv_bias": nrm(ks[4], (c_mid,)),
        # encoder latent projection
        "enc_lin_w": nrm(ks[5], (n1 * c_mid, latent_dim)),
        "enc_lin_b": nrm(ks[6], (latent_dim,)),
        # decoder latent projection
        "dec_lin_w": nrm(ks[7], (latent_dim, n1 * c_mid)),
        "dec_lin_b": nrm(ks[8], (n1 * c_mid,)),
        # decoder (mirrored) quadconv filter MLP: (n1, c_mid) -> (n0, c_in)
        "dec_filter": {"w1": nrm(ks[9], (2, hidden)), "b1": nrm(ks[10], (hidden,)),
                       "w2": nrm(ks[11], (hidden, c_in * c_mid)),
                       "b2": jnp.zeros((c_in * c_mid,), jnp.float32)},
        "dec_conv_bias": jnp.zeros((c_in,), jnp.float32),
    }
    dims = dict(c_in=c_in, c_mid=c_mid, n0=n0, n1=n1, latent_dim=latent_dim)
    return params, dims


def make_grid(n):
    xs = jnp.linspace(0.0, 1.0, n, dtype=jnp.float32)
    X, Y = jnp.meshgrid(xs, xs, indexing="ij")
    return jnp.stack([X.ravel(), Y.ravel()], axis=-1)            # (n*n, 2)


def build_mesh(dims):
    mesh0 = make_grid(int(round(dims["n0"] ** 0.5)))
    mesh1 = make_grid(int(round(dims["n1"] ** 0.5)))
    qw0 = jnp.full((dims["n0"],), 1.0 / dims["n0"], jnp.float32)
    qw1 = jnp.full((dims["n1"],), 1.0 / dims["n1"], jnp.float32)
    return {"mesh0": mesh0, "mesh1": mesh1, "qw0": qw0, "qw1": qw1}


def prepare_network(params, dims, mesh):
    """One-time (eager, outside jit) flattening of every stage's weights.

    * Latent projections are zero-padded to a 128-lane latent so the fused
      forward never produces a lane-sparse intermediate (exact: tanh(0)=0,
      padded bias lanes are zero, padded decoder rows are zero).
    * Weights are cast to bf16 ONCE here (MXU-native operands, half the DMA /
      VMEM bytes); biases are stored f32 with shape (1, N) so the kernel
      wrapper never reshapes or re-casts per call.
    """
    c_in, c_mid = dims["c_in"], dims["c_mid"]
    n0, n1, latent = dims["n0"], dims["n1"], dims["latent_dim"]
    lpad = ((latent + 127) // 128) * 128

    def stage(w, b):
        n = w.shape[1]
        return (w.astype(jnp.bfloat16), b.reshape(1, n).astype(jnp.float32))

    # stage 1: encoder quadconv (+ internal Tanh in-kernel)
    W1 = quadconv_flat_weight(params["enc_filter"], mesh["mesh1"], mesh["mesh0"],
                              c_in, c_mid, mesh["qw0"])          # (c_in*n0, c_mid*n1)
    b1 = jnp.repeat(params["enc_conv_bias"], n1)                 # (c_mid*n1,)

    # stage 2: linear to latent (+ latent Tanh), padded to lpad lanes
    W2 = jnp.zeros((n1 * c_mid, lpad), jnp.float32).at[:, :latent].set(params["enc_lin_w"])
    b2 = jnp.zeros((lpad,), jnp.float32).at[:latent].set(params["enc_lin_b"])

    # stage 3: decoder linear (+ internal Tanh).  Padded variant for the fused
    # forward (zero rows for the padded latent lanes), unpadded variant so
    # decode() needs no per-call jnp.pad.
    W3p = jnp.zeros((lpad, n1 * c_mid), jnp.float32).at[:latent, :].set(params["dec_lin_w"])
    W3u = params["dec_lin_w"]
    b3 = params["dec_lin_b"]

    # stage 4: decoder mirrored quadconv (+ output Tanh in-kernel)
    W4 = quadconv_flat_weight(params["dec_filter"], mesh["mesh0"], mesh["mesh1"],
                              c_mid, c_in, mesh["qw1"])          # (c_mid*n1, c_in*n0)
    b4 = jnp.repeat(params["dec_conv_bias"], n0)                 # (c_in*n0,)

    s1, s2, s3p, s3u, s4 = (stage(W1, b1), stage(W2, b2), stage(W3p, b3),
                            stage(W3u, b3), stage(W4, b4))
    return {
        "stages_forward": [s1, s2, s3p, s4],
        "stages_encode": [s1, s2],
        "stages_decode": [s3u, s4],
        "c_in": c_in, "n0": n0, "latent_dim": latent, "latent_pad": lpad,
    }


def encode(net, x):
    """QuadConv.encode: (B, C, N) -> (B, latent_dim); one fused pallas_call."""
    B, C, N = x.shape
    xf = x.reshape(B, C * N)                                     # pure reshape
    zp = pallas_fused_tanh_chain(xf, net["stages_encode"])       # (B, latent_pad)
    return zp[:, :net["latent_dim"]]                             # slice only at API edge


def decode(net, z):
    """QuadConv.decode: (B, latent_dim) -> (B, C, N); one fused pallas_call.

    First stage consumes the unpadded latent directly (no per-call jnp.pad).
    """
    B, _ = z.shape
    yf = pallas_fused_tanh_chain(z, net["stages_decode"])        # (B, c_in*n0)
    return yf.reshape(B, net["c_in"], net["n0"])


def quadconv_forward(net, x):
    """QuadConv.forward = decode(encode(x)), fully fused into ONE pallas_call."""
    B, C, N = x.shape
    xf = x.reshape(B, C * N)                                     # pure reshape
    yf = pallas_fused_tanh_chain(xf, net["stages_forward"])      # (B, c_in*n0)
    return yf.reshape(B, net["c_in"], net["n0"])


def reference_forward(net, x):
    """Pure-JAX reference (f32 math on the same stored bf16 weights)."""
    B, C, N = x.shape
    h = x.reshape(B, C * N)
    for W, b in net["stages_forward"]:
        h = jnp.tanh(h @ W.astype(jnp.float32) + b)
    return h.reshape(B, net["c_in"], net["n0"])


# ----------------------------------------------------------------------------
if __name__ == "__main__":
    key = jax.random.PRNGKey(0)
    kp, kx = jax.random.split(key)

    params, dims = init_params(kp, c_in=4, c_mid=8, n0=64, n1=16,
                               latent_dim=8, hidden=16)
    mesh = build_mesh(dims)

    # One-time filter construction / weight flattening / bf16 cast (outside jit).
    net = prepare_network(params, dims, mesh)
    net = jax.tree_util.tree_map(
        lambda a: jax.device_put(a) if isinstance(a, jnp.ndarray) else a, net)

    # input: batch=2, channels=4, mesh points=64  (PyTorch (B, C, N) layout)
    x = jax.random.normal(kx, (2, dims["c_in"], dims["n0"]), jnp.float32)

    fwd = jax.jit(lambda xx: quadconv_forward(net, xx))
    y = fwd(x)
    jax.block_until_ready(y)

    # correctness vs pure-JAX reference (bf16 matmul operands -> loose tol)
    y_ref = reference_forward(net, x)
    assert y.shape == x.shape, (y.shape, x.shape)
    assert y.dtype == jnp.float32
    assert bool(jnp.all(jnp.isfinite(y)))
    assert bool(jnp.allclose(y, y_ref, atol=5e-2, rtol=5e-2))

    # also exercise the split encode/decode path (same fused-chain kernel)
    z = jax.jit(lambda xx: encode(net, xx))(x)
    y2 = jax.jit(lambda zz: decode(net, zz))(z)
    jax.block_until_ready(y2)
    assert z.shape == (2, dims["latent_dim"])
    assert bool(jnp.allclose(y2, y, atol=5e-2, rtol=5e-2))

    print("KERNEL_OK")
</pallas_src>

<mosaic_0001>
module attributes {stable_mosaic.version = 11 : i64} {
  func.func @_fused_tanh_chain_kernel(%arg0: i32, %arg1: memref<8x256xf32, #tpu.memory_space<vmem>>, %arg2: memref<256x128xbf16, #tpu.memory_space<vmem>>, %arg3: memref<1x128xf32, #tpu.memory_space<vmem>>, %arg4: memref<128x128xbf16, #tpu.memory_space<vmem>>, %arg5: memref<1x128xf32, #tpu.memory_space<vmem>>, %arg6: memref<128x128xbf16, #tpu.memory_space<vmem>>, %arg7: memref<1x128xf32, #tpu.memory_space<vmem>>, %arg8: memref<128x256xbf16, #tpu.memory_space<vmem>>, %arg9: memref<1x256xf32, #tpu.memory_space<vmem>>, %arg10: memref<8x256xf32, #tpu.memory_space<vmem>>) attributes {dimension_semantics = [#tpu.dimension_semantics<parallel>], iteration_bounds = array<i64: 1>, scalar_prefetch = 0 : i64, scratch_operands = 0 : i64, tpu.core_type = #tpu.core_type<tc>, window_params = [{transform_indices = @transform_0, window_bounds = array<i64: 8, 256>}, {pipeline_mode = #tpu.pipeline_mode<synchronous>, transform_indices = @transform_1, window_bounds = array<i64: 256, 128>}, {pipeline_mode = #tpu.pipeline_mode<synchronous>, transform_indices = @transform_2, window_bounds = array<i64: 1, 128>}, {pipeline_mode = #tpu.pipeline_mode<synchronous>, transform_indices = @transform_3, window_bounds = array<i64: 128, 128>}, {pipeline_mode = #tpu.pipeline_mode<synchronous>, transform_indices = @transform_4, window_bounds = array<i64: 1, 128>}, {pipeline_mode = #tpu.pipeline_mode<synchronous>, transform_indices = @transform_5, window_bounds = array<i64: 128, 128>}, {pipeline_mode = #tpu.pipeline_mode<synchronous>, transform_indices = @transform_6, window_bounds = array<i64: 1, 128>}, {pipeline_mode = #tpu.pipeline_mode<synchronous>, transform_indices = @transform_7, window_bounds = array<i64: 128, 256>}, {pipeline_mode = #tpu.pipeline_mode<synchronous>, transform_indices = @transform_8, window_bounds = array<i64: 1, 256>}, {transform_indices = @transform_9, window_bounds = array<i64: 8, 256>}]} {
    %c0 = arith.constant 0 : index
    %c0_0 = arith.constant 0 : index
    %0 = vector.load %arg1[%c0, %c0_0] : memref<8x256xf32, #tpu.memory_space<vmem>>, vector<8x256xf32>
    %c0_1 = arith.constant 0 : index
    %c0_2 = arith.constant 0 : index
    %1 = vector.load %arg2[%c0_1, %c0_2] : memref<256x128xbf16, #tpu.memory_space<vmem>>, vector<256x128xbf16>
    %c0_3 = arith.constant 0 : index
    %c0_4 = arith.constant 0 : index
    %2 = vector.load %arg3[%c0_3, %c0_4] : memref<1x128xf32, #tpu.memory_space<vmem>>, vector<1x128xf32>
    %3 = arith.truncf %0 : vector<8x256xf32> to vector<8x256xbf16>
    %cst = arith.constant dense<0.000000e+00> : vector<8x128xf32>
    %4 = tpu.matmul %3, %1, %cst {dimension_numbers = #tpu.dot_dimension_numbers<[1], [0], [0], [1], [0, 0, 1, 1], [], []>} : vector<8x256xbf16>, vector<256x128xbf16>, vector<8x128xf32> -> vector<8x128xf32>
    %5 = vector.broadcast %2 : vector<1x128xf32> to vector<8x128xf32>
    %6 = arith.addf %4, %5 : vector<8x128xf32>
    %7 = math.tanh %6 : vector<8x128xf32>
    %c0_5 = arith.constant 0 : index
    %c0_6 = arith.constant 0 : index
    %8 = vector.load %arg4[%c0_5, %c0_6] : memref<128x128xbf16, #tpu.memory_space<vmem>>, vector<128x128xbf16>
    %c0_7 = arith.constant 0 : index
    %c0_8 = arith.constant 0 : index
    %9 = vector.load %arg5[%c0_7, %c0_8] : memref<1x128xf32, #tpu.memory_space<vmem>>, vector<1x128xf32>
    %10 = arith.truncf %7 : vector<8x128xf32> to vector<8x128xbf16>
    %cst_9 = arith.constant dense<0.000000e+00> : vector<8x128xf32>
    %11 = tpu.matmul %10, %8, %cst_9 {dimension_numbers = #tpu.dot_dimension_numbers<[1], [0], [0], [1], [0, 0, 1, 1], [], []>} : vector<8x128xbf16>, vector<128x128xbf16>, vector<8x128xf32> -> vector<8x128xf32>
    %12 = vector.broadcast %9 : vector<1x128xf32> to vector<8x128xf32>
    %13 = arith.addf %11, %12 : vector<8x128xf32>
    %14 = math.tanh %13 : vector<8x128xf32>
    %c0_10 = arith.constant 0 : index
    %c0_11 = arith.constant 0 : index
    %15 = vector.load %arg6[%c0_10, %c0_11] : memref<128x128xbf16, #tpu.memory_space<vmem>>, vector<128x128xbf16>
    %c0_12 = arith.constant 0 : index
    %c0_13 = arith.constant 0 : index
    %16 = vector.load %arg7[%c0_12, %c0_13] : memref<1x128xf32, #tpu.memory_space<vmem>>, vector<1x128xf32>
    %17 = arith.truncf %14 : vector<8x128xf32> to vector<8x128xbf16>
    %cst_14 = arith.constant dense<0.000000e+00> : vector<8x128xf32>
    %18 = tpu.matmul %17, %15, %cst_14 {dimension_numbers = #tpu.dot_dimension_numbers<[1], [0], [0], [1], [0, 0, 1, 1], [], []>} : vector<8x128xbf16>, vector<128x128xbf16>, vector<8x128xf32> -> vector<8x128xf32>
    %19 = vector.broadcast %16 : vector<1x128xf32> to vector<8x128xf32>
    %20 = arith.addf %18, %19 : vector<8x128xf32>
    %21 = math.tanh %20 : vector<8x128xf32>
    %c0_15 = arith.constant 0 : index
    %c0_16 = arith.constant 0 : index
    %22 = vector.load %arg8[%c0_15, %c0_16] : memref<128x256xbf16, #tpu.memory_space<vmem>>, vector<128x256xbf16>
    %c0_17 = arith.constant 0 : index
    %c0_18 = arith.constant 0 : index
    %23 = vector.load %arg9[%c0_17, %c0_18] : memref<1x256xf32, #tpu.memory_space<vmem>>, vector<1x256xf32>
    %24 = arith.truncf %21 : vector<8x128xf32> to vector<8x128xbf16>
    %cst_19 = arith.constant dense<0.000000e+00> : vector<8x256xf32>
    %25 = tpu.matmul %24, %22, %cst_19 {dimension_numbers = #tpu.dot_dimension_numbers<[1], [0], [0], [1], [0, 0, 1, 1], [], []>} : vector<8x128xbf16>, vector<128x256xbf16>, vector<8x256xf32> -> vector<8x256xf32>
    %26 = vector.broadcast %23 : vector<1x256xf32> to vector<8x256xf32>
    %27 = arith.addf %25, %26 : vector<8x256xf32>
    %28 = math.tanh %27 : vector<8x256xf32>
    %c0_20 = arith.constant 0 : index
    %c0_21 = arith.constant 0 : index
    %29 = vector.load %arg10[%c0_20, %c0_21] : memref<8x256xf32, #tpu.memory_space<vmem>>, vector<8x256xf32>
    tpu.vector_store %arg10[%c0_20, %c0_21], %28 {strides = array<i32>} : memref<8x256xf32, #tpu.memory_space<vmem>>, vector<8x256xf32>,
    return
  }
  func.func @transform_0(%arg0: i32) -> (i32, i32) {
    %c0_i32 = arith.constant 0 : i32
    %c0_i32_0 = arith.constant 0 : i32
    return %arg0, %c0_i32 : i32, i32
  }
  func.func @transform_1(%arg0: i32) -> (i32, i32) {
    %c0_i32 = arith.constant 0 : i32
    %c0_i32_0 = arith.constant 0 : i32
    %c0_i32_1 = arith.constant 0 : i32
    return %c0_i32, %c0_i32_0 : i32, i32
  }
  func.func @transform_2(%arg0: i32) -> (i32, i32) {
    %c0_i32 = arith.constant 0 : i32
    %c0_i32_0 = arith.constant 0 : i32
    %c0_i32_1 = arith.constant 0 : i32
    return %c0_i32, %c0_i32_0 : i32, i32
  }
  func.func @transform_3(%arg0: i32) -> (i32, i32) {
    %c0_i32 = arith.constant 0 : i32
    %c0_i32_0 = arith.constant 0 : i32
    %c0_i32_1 = arith.constant 0 : i32
    return %c0_i32, %c0_i32_0 : i32, i32
  }
  func.func @transform_4(%arg0: i32) -> (i32, i32) {
    %c0_i32 = arith.constant 0 : i32
    %c0_i32_0 = arith.constant 0 : i32
    %c0_i32_1 = arith.constant 0 : i32
    return %c0_i32, %c0_i32_0 : i32, i32
  }
  func.func @transform_5(%arg0: i32) -> (i32, i32) {
    %c0_i32 = arith.constant 0 : i32
    %c0_i32_0 = arith.constant 0 : i32
    %c0_i32_1 = arith.constant 0 : i32
    return %c0_i32, %c0_i32_0 : i32, i32
  }
  func.func @transform_6(%arg0: i32) -> (i32, i32) {
    %c0_i32 = arith.constant 0 : i32
    %c0_i32_0 = arith.constant 0 : i32
    %c0_i32_1 = arith.constant 0 : i32
    return %c0_i32, %c0_i32_0 : i32, i32
  }
  func.func @transform_7(%arg0: i32) -> (i32, i32) {
    %c0_i32 = arith.constant 0 : i32
    %c0_i32_0 = arith.constant 0 : i32
    %c0_i32_1 = arith.constant 0 : i32
    return %c0_i32, %c0_i32_0 : i32, i32
  }
  func.func @transform_8(%arg0: i32) -> (i32, i32) {
    %c0_i32 = arith.constant 0 : i32
    %c0_i32_0 = arith.constant 0 : i32
    %c0_i32_1 = arith.constant 0 : i32
    return %c0_i32, %c0_i32_0 : i32, i32
  }
  func.func @transform_9(%arg0: i32) -> (i32, i32) {
    %c0_i32 = arith.constant 0 : i32
    %c0_i32_0 = arith.constant 0 : i32
    return %arg0, %c0_i32 : i32, i32
  }
}

</mosaic_0001>

<bundles_post_ra>
// kernel: _lambda_.1
= control target key start
LH: loop header
LB: loop body
LE: loop exit
PB: predicated region body
PF: predicated region fallthrough
CT: control target
= control target key end

     0   :  { %v797_v1 = vmov 0.0   ;;  %vm798_vm0 = vmmov 0   ;;  %s1036_s1 = inlined_call_operand.vmem [shape: bf16[256,128], index: 1, kind: input, shape index: {}]   ;;  %s1037_s0 = inlined_call_operand.vmem [shape: f32[8,256], index: 0, kind: input, shape index: {}]   ;;  %s1038_s3 = inlined_call_operand.vmem [shape: bf16[128,128], index: 3, kind: input, shape index: {}]   ;;  %s1039_s5 = inlined_call_operand.vmem [shape: bf16[128,128], index: 5, kind: input, shape index: {}]   ;;  %s1040_s2 = inlined_call_operand.vmem [shape: f32[1,128], index: 2, kind: input, shape index: {}]   ;;  %s1041_s7 = inlined_call_operand.vmem [shape: bf16[128,256], index: 7, kind: input, shape index: {}]   ;;  %s1042_s4 = inlined_call_operand.vmem [shape: f32[1,128], index: 4, kind: input, shape index: {}]   ;;  %s1043_s6 = inlined_call_operand.vmem [shape: f32[1,128], index: 6, kind: input, shape index: {}]   ;;  %s1044_s8 = inlined_call_operand.vmem [shape: f32[1,256], index: 8, kind: input, shape index: {}]   ;;  %s1045_s9 = inlined_call_operand.vmem [shape: f32[8,256], index: 9, kind: output, shape index: {}]  }
   0x1   :  { %v731_v0 = vld [vmem:[%s1036_s1 + $0x40] sm:$0xff]   ;;  %688 = vmatprep.subr.bf16.mxu1 %v797_v1  ;;  %v733_v3 = vld [vmem:[%s1036_s1 + $0x48] sm:$0xff]   ;;  %v735_v5 = vld [vmem:[%s1036_s1 + $0x50] sm:$0xff]   ;;  %704 = vmatprep.mubr.msk.bf16.mxu1 %vm798_vm0, %v797_v1 }
   0x2   :  { %v732_v2 = vld [vmem:[%s1036_s1] sm:$0xff]   ;;  %648 = vmatprep.subr.bf16.mxu0 %v731_v0  ;;  %v734_v4 = vld [vmem:[%s1036_s1 + $0x8] sm:$0xff]   ;;  %v736_v6 = vld [vmem:[%s1036_s1 + $0x10] sm:$0xff]  }
   0x3   :  { %649 = vmatpush3.bf16.msra.mxu0 %v732_v2  ;;  %v737_v7 = vld [vmem:[%s1036_s1 + $0x58] sm:$0xff]   ;;  %v739_v9 = vld [vmem:[%s1036_s1 + $0x60] sm:$0xff]   ;;  %v741_v11 = vld [vmem:[%s1036_s1 + $0x68] sm:$0xff]  }
   0x4   :  { %650 = vmatprep.subr.bf16.mxu0 %v733_v3  ;;  %v738_v8 = vld [vmem:[%s1036_s1 + $0x18] sm:$0xff]   ;;  %v740_v10 = vld [vmem:[%s1036_s1 + $0x20] sm:$0xff]   ;;  %v34_v12 = vld [vmem:[%s1037_s0 + $0x8] sm:$0xff] }
   0x5   :  { %v742_v13 = vld [vmem:[%s1036_s1 + $0x28] sm:$0xff]   ;;  %v69_v14 = vpack.c.bf16 %v34_v12, %v34_v12  ;;  %v747_v15 = vld [vmem:[%s1038_s3] sm:$0xff]   ;;  %v743_v16 = vld [vmem:[%s1036_s1 + $0x70] sm:$0xff]  }
   0x6   :  { %v748_v17 = vld [vmem:[%s1038_s3 + $0x8] sm:$0xff]   ;;  %689 = vmatpush3.bf16.msra.mxu1 %v747_v15  ;;  %v744_v18 = vld [vmem:[%s1036_s1 + $0x30] sm:$0xff]   ;;  %v745_v19 = vld [vmem:[%s1036_s1 + $0x78] sm:$0xff]   ;;  %v458_v15 = vlaneseq }
   0x7   :  { %651 = vmatpush3.bf16.msra.mxu0 %v734_v4  ;;  %204 = vmatprep.mubr.bf16.mxu0 %v69_v14  ;;  %v749_v20 = vld [vmem:[%s1038_s3 + $0x10] sm:$0xff]   ;;  %v746_v21 = vld [vmem:[%s1036_s1 + $0x38] sm:$0xff]   ;;  %v33_v22 = vld [vmem:[%s1037_s0] sm:$0xff] }
   0x8   :  { %652 = vmatprep.subr.bf16.mxu0 %v735_v5  ;;  %690 = vmatprep.subr.bf16.mxu1 %v797_v1  ;;  %v68_v23 = vpack.c.bf16 %v33_v22, %v33_v22  ;;  %v750_v24 = vld [vmem:[%s1038_s3 + $0x18] sm:$0xff]   ;;  %v751_v25 = vld [vmem:[%s1038_s3 + $0x20] sm:$0xff]   ;;  %v752_v26 = vld [vmem:[%s1038_s3 + $0x28] sm:$0xff]  }
   0x9   :  { %v753_v27 = vld [vmem:[%s1038_s3 + $0x30] sm:$0xff]   ;;  %v754_v28 = vld [vmem:[%s1038_s3 + $0x38] sm:$0xff]   ;;  %v755_v29 = vld [vmem:[%s1039_s5] sm:$0xff]  }
   0xa   :  { %691 = vmatpush3.bf16.msra.mxu1 %v748_v17  ;;  %v756_v30 = vld [vmem:[%s1039_s5 + $0x8] sm:$0xff]   ;;  %v757_v31 = vld [vmem:[%s1039_s5 + $0x10] sm:$0xff]   ;;  %v758_v32 = vld [vmem:[%s1039_s5 + $0x18] sm:$0xff]  }
   0xb   :  { %653 = vmatpush3.bf16.msra.mxu0 %v736_v6  ;;  %692 = vmatprep.subr.bf16.mxu1 %v797_v1  ;;  %v597_v34 = vld [vmem:[%s1040_s2] ss:$0 sm:$0xff]  ;;  %v760_v43 = vld [vmem:[%s1039_s5 + $0x28] sm:$0xff]   ;;  %v761_v44 = vld [vmem:[%s1039_s5 + $0x30] sm:$0xff]   ;;  %v799_v6 = vmov 0  }
   0xc   :  { %654 = vmatprep.subr.bf16.mxu0 %v737_v7  ;;  %v759_v42 = vld [vmem:[%s1039_s5 + $0x20] sm:$0xff]   ;;  %v762_v45 = vld [vmem:[%s1039_s5 + $0x38] sm:$0xff]  }
   0xd   :  { %v763_v46 = vld [vmem:[%s1041_s7] ss:$8 sps:$4 sm:$0xff]   ;;  %v765_v47 = vld [vmem:[%s1041_s7 + $0x4] ss:$8 sps:$4 sm:$0xff]   ;;  %v768_v48 = vld [vmem:[%s1041_s7 + $0x14] ss:$8 sps:$4 sm:$0xff]  }
   0xe   :  { %693 = vmatpush3.bf16.msra.mxu1 %v749_v20  ;;  %v766_v49 = vld [vmem:[%s1041_s7 + $0x10] ss:$8 sps:$4 sm:$0xff]   ;;  %v771_v50 = vld [vmem:[%s1041_s7 + $0x24] ss:$8 sps:$4 sm:$0xff]   ;;  %v769_v51 = vld [vmem:[%s1041_s7 + $0x20] ss:$8 sps:$4 sm:$0xff]  }
   0xf   :  { %655 = vmatpush3.bf16.msra.mxu0 %v738_v8  ;;  %694 = vmatprep.subr.bf16.mxu1 %v797_v1  ;;  %v774_v52 = vld [vmem:[%s1041_s7 + $0x34] ss:$8 sps:$4 sm:$0xff]   ;;  %v772_v53 = vld [vmem:[%s1041_s7 + $0x30] ss:$8 sps:$4 sm:$0xff]   ;;  %v614_v54 = vld [vmem:[%s1042_s4] ss:$0 sm:$0xff] }
  0x10   :  { %656 = vmatprep.subr.bf16.mxu0 %v739_v9  ;;  %v777_v62 = vld [vmem:[%s1041_s7 + $0x44] ss:$8 sps:$4 sm:$0xff]   ;;  %v775_v63 = vld [vmem:[%s1041_s7 + $0x40] ss:$8 sps:$4 sm:$0xff]   ;;  %v780_v0 = vld [vmem:[%s1041_s7 + $0x54] ss:$8 sps:$4 sm:$0xff]  }
  0x11   :  { %v783_v2 = vld [vmem:[%s1041_s7 + $0x64] ss:$8 sps:$4 sm:$0xff]   ;;  %v781_v3 = vld [vmem:[%s1041_s7 + $0x60] ss:$8 sps:$4 sm:$0xff]   ;;  %v786_v4 = vld [vmem:[%s1041_s7 + $0x74] ss:$8 sps:$4 sm:$0xff]  }
  0x12   :  { %695 = vmatpush3.bf16.msra.mxu1 %v750_v24  ;;  %v784_v5 = vld [vmem:[%s1041_s7 + $0x70] ss:$8 sps:$4 sm:$0xff]   ;;  %v623_v7 = vld [vmem:[%s1043_s6] ss:$0 sm:$0xff] }
  0x13   :  { %657 = vmatpush3.bf16.msra.mxu0 %v740_v10  ;;  %696 = vmatprep.subr.bf16.mxu1 %v797_v1 }
  0x14   :  { %658 = vmatprep.subr.bf16.mxu0 %v741_v11 }
  0x16   :  { %697 = vmatpush3.bf16.msra.mxu1 %v751_v25 }
  0x17   :  { %659 = vmatpush3.bf16.msra.mxu0 %v742_v13  ;;  %698 = vmatprep.subr.bf16.mxu1 %v797_v1 }
  0x18   :  { %660 = vmatprep.subr.bf16.mxu0 %v743_v16  ;;  %v459_v16 = vshrl.u32 %v458_v15, 7 }
  0x1a   :  { %699 = vmatpush3.bf16.msra.mxu1 %v752_v26  ;;  %v460_v17 = vsub.s32 0, %v459_v16 }
  0x1b   :  { %661 = vmatpush3.bf16.msra.mxu0 %v744_v18  ;;  %700 = vmatprep.subr.bf16.mxu1 %v797_v1  ;;  %v455_v18 = vld [vmem:[%s1044_s8] sm:$0x3] }
  0x1c   :  { %662 = vmatprep.subr.bf16.mxu0 %v745_v19  ;;  %v464_v19 = vsub.s32 1, %v459_v16  ;;  %v461_v20 = vrot.slane %v455_v18, %v460_v17 }
  0x1e   :  { %701 = vmatpush3.bf16.msra.mxu1 %v753_v27 }
  0x1f   :  { %663 = vmatpush3.bf16.msra.mxu0 %v746_v21  ;;  %702 = vmatprep.subr.bf16.mxu1 %v797_v1  ;;  %v465_v21 = vrot.slane %v455_v18, %v464_v19 }
  0x20   :  { %708 = vmatprep.subr.bf16.mxu0 %v797_v1 }
  0x22   :  { %205 = vmatmul.mubr.bf16.vlgmr.msra.gmra.mrb[0].mxu0 %v68_v23  ;;  %703 = vmatpush3.bf16.msra.mxu1 %v754_v28 }
  0x23   :  { %724 = vmatprep.mubr.msk.bf16.mxu0 %vm798_vm0, %v797_v1  ;;  %709 = vmatpush3.bf16.msra.mxu0 %v755_v29 }
  0x24   :  { %710 = vmatprep.subr.bf16.mxu0 %v797_v1  ;;  %548 = vmatprep.subr.bf16.mxu1 %v765_v47 }
  0x27   :  { %711 = vmatpush3.bf16.msra.mxu0 %v756_v30 }
  0x28   :  { %712 = vmatprep.subr.bf16.mxu0 %v797_v1 }
  0x2b   :  { %713 = vmatpush3.bf16.msra.mxu0 %v757_v31 }
  0x2c   :  { %714 = vmatprep.subr.bf16.mxu0 %v797_v1 }
  0x2f   :  { %715 = vmatpush3.bf16.msra.mxu0 %v758_v32 }
  0x30   :  { %716 = vmatprep.subr.bf16.mxu0 %v797_v1 }
  0x33   :  { %717 = vmatpush3.bf16.msra.mxu0 %v759_v42 }
  0x34   :  { %718 = vmatprep.subr.bf16.mxu0 %v797_v1 }
  0x37   :  { %719 = vmatpush3.bf16.msra.mxu0 %v760_v43 }
  0x38   :  { %720 = vmatprep.subr.bf16.mxu0 %v797_v1 }
  0x3b   :  { %721 = vmatpush3.bf16.msra.mxu0 %v761_v44 }
  0x3c   :  { %722 = vmatprep.subr.bf16.mxu0 %v797_v1  ;;  %v778_v1 = vld [vmem:[%s1041_s7 + $0x50] ss:$8 sps:$4 sm:$0xff]  }
  0x3f   :  { %723 = vmatpush3.bf16.msra.mxu0 %v762_v45 }
  0xf5   :  { %v664_v33 = vpop.f32.mrb[0].mxu0 }
  0xf6   :  { %v665_v35 = vpop.f32.mrb[1].mxu0 }
  0xf7   :  { %v666_v36 = vadd.f32 %v665_v35, %v664_v33  ;;  %v667_v37 = vpop.f32.mrb[2].mxu0 }
  0xf8   :  { %v668_v38 = vpop.f32.mrb[3].mxu0 }
  0xf9   :  { %v207_v39 = vadd.f32 %v666_v36, %v597_v34 }
  0xfb   :  { %787 = vtanh.f32 %v207_v39 }
 0x105   :  { %v788_v40 = vpop.eup %787 }
 0x106   :  { %v230_v41 = vpack.c.bf16 %v788_v40, %v788_v40 }
 0x108   :  { %705 = vmatmul.mubr.bf16.vlgmr.msra.gmra.mrb[0].mxu1 %v230_v41 }
 0x109   :  { %549 = vmatpush1.bf16.msra.mxu1 %v763_v46  ;;  %580 = vmatprep.mubr.bf16.mxu1 %v799_v6 }
 0x10a   :  { %550 = vmatprep.subr.bf16.mxu1 %v768_v48 }
 0x10d   :  { %551 = vmatpush1.bf16.msra.mxu1 %v766_v49 }
 0x10e   :  { %552 = vmatprep.subr.bf16.mxu1 %v771_v50 }
 0x111   :  { %553 = vmatpush1.bf16.msra.mxu1 %v769_v51 }
 0x112   :  { %554 = vmatprep.subr.bf16.mxu1 %v774_v52 }
 0x115   :  { %555 = vmatpush1.bf16.msra.mxu1 %v772_v53 }
 0x116   :  { %556 = vmatprep.subr.bf16.mxu1 %v777_v62 }
 0x119   :  { %557 = vmatpush1.bf16.msra.mxu1 %v775_v63 }
 0x11a   :  { %558 = vmatprep.subr.bf16.mxu1 %v780_v0 }
 0x11d   :  { %559 = vmatpush1.bf16.msra.mxu1 %v778_v1 }
 0x11e   :  { %560 = vmatprep.subr.bf16.mxu1 %v783_v2 }
 0x121   :  { %561 = vmatpush1.bf16.msra.mxu1 %v781_v3 }
 0x122   :  { %562 = vmatprep.subr.bf16.mxu1 %v786_v4 }
 0x125   :  { %563 = vmatpush1.bf16.msra.mxu1 %v784_v5 }
 0x1db   :  { %v319_v55 = vpop.f32.mrb[0].mxu1 }
 0x1dc   :  { %v320_v56 = vadd.f32 %v614_v54, %v319_v55  ;;  %v706_v57 = vpop.f32.mrb[1].mxu1 }
 0x1dd   :  { %v322_v58 = vpop.f32.mrb[2].mxu1 }
 0x1de   :  { %789 = vtanh.f32 %v320_v56  ;;  %v707_v59 = vpop.f32.mrb[3].mxu1 }
 0x1e8   :  { %v790_v60 = vpop.eup %789 }
 0x1e9   :  { %v343_v61 = vpack.c.bf16 %v790_v60, %v790_v60 }
 0x1eb   :  { %725 = vmatmul.mubr.bf16.vlgmr.msra.gmra.mrb[4].mxu0 %v343_v61 }
 0x2be   :  { %v432_v8 = vpop.f32.mrb[4].mxu0 }
 0x2bf   :  { %v433_v9 = vadd.f32 %v623_v7, %v432_v8  ;;  %v726_v10 = vpop.f32.mrb[5].mxu0 }
 0x2c0   :  { %v435_v11 = vpop.f32.mrb[6].mxu0 }
 0x2c1   :  { %791 = vtanh.f32 %v433_v9  ;;  %v727_v12 = vpop.f32.mrb[7].mxu0 }
 0x2cb   :  { %v792_v13 = vpop.eup %791 }
 0x2cc   :  { %v456_v14 = vpack.c.bf16 %v792_v13, %v792_v13 }
 0x2ce   :  { %581 = vmatmul.mubr.bf16.vlgmr.msra.gmra.mrb[4].mxu1 %v456_v14 }
 0x3a1   :  { %v582_v22 = vpop.f32.mrb[4].mxu1 }
 0x3a2   :  { %v583_v23 = vadd.f32 %v582_v22, %v461_v20  ;;  %v584_v24 = vpop.f32.mrb[5].mxu1 }
 0x3a3   :  { %v585_v25 = vadd.f32 %v584_v24, %v465_v21  ;;  %v586_v26 = vpop.f32.mrb[6].mxu1 }
 0x3a4   :  { %793 = vtanh.f32 %v583_v23  ;;  %v587_v27 = vpop.f32.mrb[7].mxu1 }
 0x3a5   :  { %795 = vtanh.f32 %v585_v25 }
 0x3ae   :  { %v794_v28 = vpop.eup %793 }
 0x3af   :  { %v796_v29 = vpop.eup %795  ;;  %591 = vst [vmem:[%s1045_s9] sm:$0xff] %v794_v28 }
 0x3b0   :  { %592 = vst [vmem:[%s1045_s9 + $0x8] sm:$0xff] %v796_v29 }

</bundles_post_ra>
